<compile_context>
chip_gen: v5e
topology: v5e:2x2
jax: 0.10.0
libtpu: 0.0.40
codegen_flags: <defaults>
</compile_context>

<pallas_src>
import jax
import jax.numpy as jnp
from jax.experimental import pallas as pl
from jax.experimental.pallas import tpu as pltpu


def _permute_0213_kernel(x_ref, o_ref):
    # x_ref: (TC, TH, W) tile of one batch element; o_ref: (TH, TC, W) tile.
    # Single whole-tile relayout (C <-> H sublane shuffle done in one shot).
    o_ref[...] = jnp.swapaxes(x_ref[...], 0, 1)


def _largest_aligned_divisor(dim, pack, cap):
    """Largest divisor of `dim` that is a multiple of `pack` and <= cap.

    If `dim` is not a multiple of `pack`, return `dim` itself (a block dim
    equal to the full array dim is always a legal TPU block shape).
    """
    if dim % pack != 0:
        return dim
    cap = max(pack, min(dim, cap))
    best = pack
    for t in range(pack, cap + 1, pack):
        if dim % t == 0:
            best = t
    return best


def _tile_sizes(C, H, W, itemsize, budget_bytes=2 << 20):
    """Pick (TC, TH): sublane-aligned divisors of C/H, ~budget_bytes per tile."""
    pack = max(8, 32 // itemsize)           # f32 -> 8, bf16 -> 16, int8 -> 32
    rows_budget = max(pack * pack, budget_bytes // max(1, W * itemsize))
    th = _largest_aligned_divisor(H, pack, max(pack, rows_budget // pack))
    tc = _largest_aligned_divisor(C, pack, max(pack, rows_budget // th))
    return tc, th


def model_forward(x):
    """Pallas equivalent of Model.forward: returns x.permute(0, 2, 1, 3)."""
    # TODO(synk): the module's conv weight/bias and the F.conv2d / hardtanh
    # calls are dead code (results discarded; the conv2d args are invalid), so
    # they are intentionally not replicated nor passed through the kernel.
    N, C, H, W = x.shape
    itemsize = jnp.dtype(x.dtype).itemsize
    tc, th = _tile_sizes(C, H, W, itemsize)

    grid = (N, H // th, C // tc)
    return pl.pallas_call(
        _permute_0213_kernel,
        out_shape=jax.ShapeDtypeStruct((N, H, C, W), x.dtype),
        grid=grid,
        in_specs=[pl.BlockSpec((None, tc, th, W), lambda n, h, c: (n, c, h, 0))],
        out_specs=pl.BlockSpec((None, th, tc, W), lambda n, h, c: (n, h, c, 0)),
        compiler_params=pltpu.CompilerParams(
            dimension_semantics=("parallel", "parallel", "parallel")),
    )(x)


def _check(x):
    out = jax.block_until_ready(jax.jit(model_forward)(x))
    ref = jnp.transpose(x, (0, 2, 1, 3))
    assert out.shape == ref.shape, (out.shape, ref.shape)
    assert out.dtype == x.dtype
    assert jnp.array_equal(out, ref), "mismatch vs reference permute"


if __name__ == "__main__":
    key = jax.random.PRNGKey(0)
    k1, k2, k3 = jax.random.split(key, 3)

    # Shape from the reference program: torch.randn(1, 2, 2, 2).
    x_small = jax.random.normal(k1, (1, 2, 2, 2), dtype=jnp.float32)
    _check(x_small)

    # Small shape consistent with the module (partially aligned: H % 8 == 0).
    x_mid = jax.random.normal(k2, (2, 4, 16, 16), dtype=jnp.float32)
    _check(x_mid)

    # Fully (8,128)-aligned shape exercising aligned tiling and lane-dense
    # (unmasked) stores over the full W = 128.
    x_big = jax.random.normal(k3, (2, 16, 32, 128), dtype=jnp.float32)
    _check(x_big)

    print("KERNEL_OK")
</pallas_src>

<mosaic_0001>
module attributes {stable_mosaic.version = 11 : i64} {
  func.func @_permute_0213_kernel(%arg0: i32, %arg1: i32, %arg2: i32, %arg3: memref<1x2x2x2xf32, #tpu.memory_space<vmem>>, %arg4: memref<1x2x2x2xf32, #tpu.memory_space<vmem>>) attributes {dimension_semantics = [#tpu.dimension_semantics<parallel>, #tpu.dimension_semantics<parallel>, #tpu.dimension_semantics<parallel>], iteration_bounds = array<i64: 1, 1, 1>, scalar_prefetch = 0 : i64, scratch_operands = 0 : i64, tpu.core_type = #tpu.core_type<tc>, window_params = [{transform_indices = @transform_0, window_bounds = array<i64: 1, 2, 2, 2>}, {transform_indices = @transform_1, window_bounds = array<i64: 1, 2, 2, 2>}]} {
    %c0 = arith.constant 0 : index
    %c0_0 = arith.constant 0 : index
    %c0_1 = arith.constant 0 : index
    %c0_2 = arith.constant 0 : index
    %0 = vector.load %arg3[%c0, %c0_0, %c0_1, %c0_2] : memref<1x2x2x2xf32, #tpu.memory_space<vmem>>, vector<1x2x2x2xf32>
    %1 = vector.shape_cast %0 : vector<1x2x2x2xf32> to vector<2x2x2xf32>
    %2 = tpu.transpose %1, [1, 0, 2] : vector<2x2x2xf32> -> vector<2x2x2xf32>
    %c0_3 = arith.constant 0 : index
    %c0_4 = arith.constant 0 : index
    %c0_5 = arith.constant 0 : index
    %c0_6 = arith.constant 0 : index
    %3 = vector.load %arg4[%c0_3, %c0_4, %c0_5, %c0_6] : memref<1x2x2x2xf32, #tpu.memory_space<vmem>>, vector<1x2x2x2xf32>
    %4 = vector.shape_cast %3 : vector<1x2x2x2xf32> to vector<2x2x2xf32>
    %5 = vector.shape_cast %2 : vector<2x2x2xf32> to vector<1x2x2x2xf32>
    tpu.vector_store %arg4[%c0_3, %c0_4, %c0_5, %c0_6], %5 {strides = array<i32>} : memref<1x2x2x2xf32, #tpu.memory_space<vmem>>, vector<1x2x2x2xf32>,
    return
  }
  func.func @transform_0(%arg0: i32, %arg1: i32, %arg2: i32) -> (i32, i32, i32, i32) {
    %c0_i32 = arith.constant 0 : i32
    %c0_i32_0 = arith.constant 0 : i32
    return %arg0, %arg2, %arg1, %c0_i32 : i32, i32, i32, i32
  }
  func.func @transform_1(%arg0: i32, %arg1: i32, %arg2: i32) -> (i32, i32, i32, i32) {
    %c0_i32 = arith.constant 0 : i32
    %c0_i32_0 = arith.constant 0 : i32
    return %arg0, %arg1, %arg2, %c0_i32 : i32, i32, i32, i32
  }
}

</mosaic_0001>

<bundles_post_ra>
// kernel: model_forward.1
= control target key start
LH: loop header
LB: loop body
LE: loop exit
PB: predicated region body
PF: predicated region fallthrough
CT: control target
= control target key end

     0   :  { %6 = vsyncpa [#allocation3], 0  ;;  %s136_s0 = inlined_call_operand.hbm [shape: f32[1,2,2,2], index: 0, kind: input, shape index: {}]   ;;  %s137_s1 = inlined_call_operand.hbm [shape: f32[1,2,2,2], index: 1, kind: output, shape index: {}]  }
   0x1   :  { %7 = vsyncpa [#allocation4], 0  ;;  %s12_s8 = sshll.u32 %s136_s0, 4  ;;  %s115_s9 = smov [#allocation2]   ;;  %s13_s8 = int_to_ptr.hbm [resolvable:$true] %s12_s8 }
   0x2   :  { %s14_s10 = sshll.u32 %s115_s9, 4  ;;  %s116_s11 = smov 32   ;;  %s15_s10 = int_to_ptr.vmem [resolvable:$true] %s14_s10 }
   0x3   :  { %s117_s12 = smov 2  }
   0x4   :  { %20 = dma.hbm_to_vmem [thread:$0]  %s13_s8, 64, %s15_s10, [#allocation3], %s116_s11, %s116_s11, %s117_s12  }
   0x5   :  { %111 = dma.done.wait [#allocation3], 64  }
   0x6   :  { %112 = vsyncadd [#allocation3], 4294967232  ;;  %v118_v0 = vmov 1934713408   ;;  %v25_v2 = vld [vmem:[#allocation2] sm:$0x3] }
   0x7   :  { %v31_v1 = vunpack.c.l.s4 %v118_v0  ;;  %v26_v3 = vld [vmem:[#allocation2 + $0x2] sm:$0x3]  ;;  %vm28_vm0 = vcmask 1047556   ;;  %vm36_vm1 = vcmask 9216   ;;  %s119_s0 = smov [#allocation5]   ;;  %s45_s16 = sshll.u32 %s137_s1, 4  ;;  %s46_s16 = int_to_ptr.hbm [resolvable:$true] %s45_s16 }
   0x8   :  { %v27_v5 = vrot.slane %v26_v3, 4  ;;  %s43_s13 = sshll.u32 %s119_s0, 4  ;;  %s44_s13 = int_to_ptr.vmem [resolvable:$true] %s43_s13 }
   0x9   :  { %v32_v4 = vunpack.c.0.s8 %v31_v1 }
   0xa   :  { %v29_v6 = vsel %vm28_vm0, %v27_v5, %v25_v2 }
   0xb   :  { %v33_v7 = vperm.slane %v29_v6, %v32_v4 }
   0xd   :  { %37 = vst.msk [vmem:[#allocation5] sm:$0x3] %vm36_vm1, %v33_v7  ;;  %v34_v8 = vrot.slane %v33_v7, 4 }
   0xf   :  { %v35_v9 = vsel %vm28_vm0, 0.0, %v34_v8 }
  0x10   :  { %38 = vst.msk [vmem:[#allocation5 + $0x2] sm:$0x3] %vm36_vm1, %v35_v9 }
  0x11   :  { %51 = dma.vmem_to_hbm [thread:$0]  %s44_s13, 64, %s46_s16, [#allocation4], %s116_s11, %s116_s11, %s117_s12  }
  0x12   :  { %113 = dma.done.wait [#allocation4], 64  }
  0x13   :  { %114 = vsyncadd [#allocation4], 4294967232 }
  0x14   :  { %56 = vsyncpa [#allocation3], 1 }
  0x15   :  { %57 = vsyncpa [#allocation4], 1 }

</bundles_post_ra>
